<compile_context>
chip_gen: v7x
topology: tpu7x:2x2x1
jax: 0.10.0
libtpu: 0.0.40
codegen_flags: <defaults>
</compile_context>

<pallas_src>
import jax
import jax.numpy as jnp
from jax.experimental import pallas as pl
from jax.experimental.pallas import tpu as pltpu


def _round_up(x: int, m: int) -> int:
    return ((x + m - 1) // m) * m


def mlp_kernel(x_ref, w_ref, b_ref, o_ref, acc_ref):
    # x_ref: (tm, tk) bf16   w_ref: (tk, tn) bf16   b_ref: (1, tn) f32
    # o_ref: (tm, tn) out dtype   acc_ref: (tm, tn) f32 scratch
    k = pl.program_id(2)

    @pl.when(k == 0)
    def _init():
        acc_ref[...] = jnp.zeros_like(acc_ref)

    acc_ref[...] += jnp.dot(
        x_ref[...], w_ref[...], preferred_element_type=jnp.float32
    )

    @pl.when(k == pl.num_programs(2) - 1)
    def _finalize():
        o_ref[...] = jnp.tanh(acc_ref[...] + b_ref[...]).astype(o_ref.dtype)


def mlp_layer(features, weight, bias, *, tm=256, tn=256, tk=512):
    """features: [B, K] | weight: [N, K] (PyTorch nn.Linear layout) | bias: [N]."""
    B, K = features.shape
    N, K2 = weight.shape
    assert K == K2 and bias.shape == (N,)
    out_dtype = features.dtype

    # bf16 MXU operands with f32 accumulation; bias stays f32.
    x = features.astype(jnp.bfloat16)
    w_t = weight.T.astype(jnp.bfloat16)        # [K, N]
    b2d = bias.astype(jnp.float32).reshape(1, N)

    # Clamp tile sizes to the (aligned) problem size.
    # Sublane dim -> multiple of 8, lane dims -> multiples of 128.
    tm = min(tm, _round_up(B, 8))
    tn = min(tn, _round_up(N, 128))
    tk = min(tk, _round_up(K, 128))

    Bp = _round_up(B, tm)
    Np = _round_up(N, tn)
    Kp = _round_up(K, tk)

    if (Bp, Kp) != (B, K):
        x = jnp.pad(x, ((0, Bp - B), (0, Kp - K)))
    if (Kp, Np) != (K, N):
        w_t = jnp.pad(w_t, ((0, Kp - K), (0, Np - N)))
    if Np != N:
        b2d = jnp.pad(b2d, ((0, 0), (0, Np - N)))

    grid = (Bp // tm, Np // tn, Kp // tk)

    # Explicit VMEM budget: double-buffered bf16 x/w tiles + f32 bias row,
    # double-buffered output tile, plus the f32 accumulator scratch.
    vmem_est = (
        2 * (tm * tk + tk * tn) * 2                     # x, w tiles (bf16), 2x buffered
        + 2 * tn * 4                                    # bias row (f32), 2x buffered
        + 2 * tm * tn * jnp.dtype(out_dtype).itemsize   # output tile, 2x buffered
        + tm * tn * 4                                   # accumulator scratch
    )
    vmem_limit = min(64 * 1024 * 1024, max(32 * 1024 * 1024, 2 * vmem_est))

    out_padded = pl.pallas_call(
        mlp_kernel,
        out_shape=jax.ShapeDtypeStruct((Bp, Np), out_dtype),
        grid_spec=pltpu.PrefetchScalarGridSpec(
            num_scalar_prefetch=0,
            grid=grid,
            in_specs=[
                pl.BlockSpec((tm, tk), lambda i, j, k: (i, k)),  # x tile
                pl.BlockSpec((tk, tn), lambda i, j, k: (k, j)),  # weight tile
                pl.BlockSpec((1, tn), lambda i, j, k: (0, j)),   # bias row
            ],
            out_specs=pl.BlockSpec((tm, tn), lambda i, j, k: (i, j)),
            scratch_shapes=[pltpu.VMEM((tm, tn), jnp.float32)],
        ),
        compiler_params=pltpu.CompilerParams(
            dimension_semantics=("parallel", "parallel", "arbitrary"),
            vmem_limit_bytes=int(vmem_limit),
        ),
    )(x, w_t, b2d)

    return out_padded[:B, :N]


if __name__ == "__main__":
    key = jax.random.PRNGKey(0)
    k_x, k_w, k_b = jax.random.split(key, 3)

    # Small demo shapes that still exercise padding (N=48 -> padded to 128)
    # and the K-reduction pipeline (tk=128 -> 2 reduction steps).
    batch, input_size, output_size = 16, 256, 48

    x = jax.random.normal(k_x, (batch, input_size), dtype=jnp.float32)
    # PyTorch nn.Linear layout: weight [out, in], bias [out].
    w = jax.random.normal(k_w, (output_size, input_size), dtype=jnp.float32) * 0.02
    b = jax.random.normal(k_b, (output_size,), dtype=jnp.float32) * 0.02

    out = mlp_layer(x, w, b, tk=128)
    out = jax.block_until_ready(out)

    # Reference (same semantics as the PyTorch forward), full f32.
    ref = jnp.tanh(x @ w.T + b)
    assert out.shape == ref.shape, "shape mismatch"
    # bf16 MXU operands -> loose tolerance vs. the f32 reference.
    assert jnp.allclose(out, ref, atol=3e-2, rtol=3e-2), "mismatch vs reference"

    print("KERNEL_OK")
</pallas_src>

<mosaic_0001>
module attributes {stable_mosaic.version = 11 : i64} {
  func.func @mlp_kernel(%arg0: i32, %arg1: i32, %arg2: i32, %arg3: memref<16x128xbf16, #tpu.memory_space<vmem>>, %arg4: memref<128x128xbf16, #tpu.memory_space<vmem>>, %arg5: memref<1x128xf32, #tpu.memory_space<vmem>>, %arg6: memref<16x128xf32, #tpu.memory_space<vmem>>, %arg7: memref<16x128xf32, #tpu.memory_space<vmem>>) attributes {dimension_semantics = [#tpu.dimension_semantics<parallel>, #tpu.dimension_semantics<parallel>, #tpu.dimension_semantics<arbitrary>], iteration_bounds = array<i64: 1, 1, 2>, scalar_prefetch = 0 : i64, scratch_operands = 1 : i64, tpu.core_type = #tpu.core_type<tc>, window_params = [{transform_indices = @transform_0, window_bounds = array<i64: 16, 128>}, {transform_indices = @transform_1, window_bounds = array<i64: 128, 128>}, {transform_indices = @transform_2, window_bounds = array<i64: 1, 128>}, {transform_indices = @transform_3, window_bounds = array<i64: 16, 128>}]} {
    %c0_i32 = arith.constant 0 : i32
    %0 = arith.cmpi eq, %arg2, %c0_i32 : i32
    %1 = arith.extui %0 : i1 to i32
    %c0_i32_0 = arith.constant 0 : i32
    %2 = arith.cmpi ne, %1, %c0_i32_0 : i32
    scf.if %2 {
      %cst_9 = arith.constant 0.000000e+00 : f32
      %12 = vector.broadcast %cst_9 : f32 to vector<16x128xf32>
      %c0_10 = arith.constant 0 : index
      %c0_11 = arith.constant 0 : index
      %13 = vector.load %arg7[%c0_10, %c0_11] : memref<16x128xf32, #tpu.memory_space<vmem>>, vector<16x128xf32>
      tpu.vector_store %arg7[%c0_10, %c0_11], %12 {strides = array<i32>} : memref<16x128xf32, #tpu.memory_space<vmem>>, vector<16x128xf32>,
    } else {
    }
    %c0 = arith.constant 0 : index
    %c0_1 = arith.constant 0 : index
    %3 = vector.load %arg7[%c0, %c0_1] : memref<16x128xf32, #tpu.memory_space<vmem>>, vector<16x128xf32>
    %c0_2 = arith.constant 0 : index
    %c0_3 = arith.constant 0 : index
    %4 = vector.load %arg3[%c0_2, %c0_3] : memref<16x128xbf16, #tpu.memory_space<vmem>>, vector<16x128xbf16>
    %c0_4 = arith.constant 0 : index
    %c0_5 = arith.constant 0 : index
    %5 = vector.load %arg4[%c0_4, %c0_5] : memref<128x128xbf16, #tpu.memory_space<vmem>>, vector<128x128xbf16>
    %cst = arith.constant dense<0.000000e+00> : vector<16x128xf32>
    %6 = tpu.matmul %4, %5, %cst {dimension_numbers = #tpu.dot_dimension_numbers<[1], [0], [0], [1], [0, 0, 1, 1], [], []>} : vector<16x128xbf16>, vector<128x128xbf16>, vector<16x128xf32> -> vector<16x128xf32>
    %7 = arith.addf %3, %6 : vector<16x128xf32>
    %c0_6 = arith.constant 0 : index
    %c0_7 = arith.constant 0 : index
    %8 = vector.load %arg7[%c0_6, %c0_7] : memref<16x128xf32, #tpu.memory_space<vmem>>, vector<16x128xf32>
    tpu.vector_store %arg7[%c0_6, %c0_7], %7 {strides = array<i32>} : memref<16x128xf32, #tpu.memory_space<vmem>>, vector<16x128xf32>,
    %c1_i32 = arith.constant 1 : i32
    %9 = arith.cmpi eq, %arg2, %c1_i32 : i32
    %10 = arith.extui %9 : i1 to i32
    %c0_i32_8 = arith.constant 0 : i32
    %11 = arith.cmpi ne, %10, %c0_i32_8 : i32
    scf.if %11 {
      %c0_9 = arith.constant 0 : index
      %c0_10 = arith.constant 0 : index
      %12 = vector.load %arg7[%c0_9, %c0_10] : memref<16x128xf32, #tpu.memory_space<vmem>>, vector<16x128xf32>
      %c0_11 = arith.constant 0 : index
      %c0_12 = arith.constant 0 : index
      %13 = vector.load %arg5[%c0_11, %c0_12] : memref<1x128xf32, #tpu.memory_space<vmem>>, vector<1x128xf32>
      %14 = vector.broadcast %13 : vector<1x128xf32> to vector<16x128xf32>
      %15 = arith.addf %12, %14 : vector<16x128xf32>
      %16 = math.tanh %15 : vector<16x128xf32>
      %c0_13 = arith.constant 0 : index
      %c0_14 = arith.constant 0 : index
      %17 = vector.load %arg6[%c0_13, %c0_14] : memref<16x128xf32, #tpu.memory_space<vmem>>, vector<16x128xf32>
      tpu.vector_store %arg6[%c0_13, %c0_14], %16 {strides = array<i32>} : memref<16x128xf32, #tpu.memory_space<vmem>>, vector<16x128xf32>,
    } else {
    }
    return
  }
  func.func @transform_0(%arg0: i32, %arg1: i32, %arg2: i32) -> (i32, i32) {
    %c0_i32 = arith.constant 0 : i32
    return %arg0, %arg2 : i32, i32
  }
  func.func @transform_1(%arg0: i32, %arg1: i32, %arg2: i32) -> (i32, i32) {
    %c0_i32 = arith.constant 0 : i32
    return %arg2, %arg1 : i32, i32
  }
  func.func @transform_2(%arg0: i32, %arg1: i32, %arg2: i32) -> (i32, i32) {
    %c0_i32 = arith.constant 0 : i32
    %c0_i32_0 = arith.constant 0 : i32
    return %c0_i32, %arg1 : i32, i32
  }
  func.func @transform_3(%arg0: i32, %arg1: i32, %arg2: i32) -> (i32, i32) {
    %c0_i32 = arith.constant 0 : i32
    return %arg0, %arg1 : i32, i32
  }
}

</mosaic_0001>

<bundles_post_ra>
// kernel: tpu_custom_call.1
= control target key start
LH: loop header
LB: loop body
LE: loop exit
PB: predicated region body
PF: predicated region fallthrough
CT: control target
= control target key end

     0   :  { %8 = vsyncpa [#allocation4], 0  ;;  %s1075_s0 = inlined_call_operand.hbm [shape: bf16[16,256], index: 0, kind: input, shape index: {}]   ;;  %s1076_s1 = inlined_call_operand.hbm [shape: bf16[256,128], index: 1, kind: input, shape index: {}]   ;;  %s1077_s2 = inlined_call_operand.vmem [shape: f32[1,128], index: 2, kind: input, shape index: {}]   ;;  %s1078_s3 = inlined_call_operand.hbm [shape: f32[16,128], index: 3, kind: output, shape index: {}]  }
   0x1   :  { %10 = vsyncpa [#allocation4 + $0x1], 0 }
   0x2   :  { %11 = vsyncpa [#allocation7], 0 }
   0x3   :  { %13 = vsyncpa [#allocation7 + $0x1], 0 }
   0x4   :  { %14 = vsyncpa [#allocation5], 0  ;;  %s853_s12 = smov 0   ;;  %s855_s13 = smov 0  }
   0x5   :  { %s857_s14 = smov 0   ;;  %s859_s15 = smov 0  }
   0x6   :  { %s861_s16 = smov 0   ;;  %s863_s17 = smov 0  }
   0x7 LB: > { %s530_s18 = sadd.s32 4294967295, %s820_s17   ;;  %s32_s19 = sadd.s32 1, %s816_s16  ;;  %s820_s17 = sphi %s863_s17, %s20_s17   ;;  %s816_s16 = sphi %s861_s16, %s1091_s16   ;;  %s812_s15 = sphi %s859_s15, %s1090_s15   ;;  %s808_s14 = sphi %s857_s14, %s1089_s14   ;;  %s804_s13 = sphi %s855_s13, %s1088_s13   ;;  %s800_s12 = sphi %s853_s12, %s1087_s12  }
   0x8   : > { %p33_p0 = scmp.ge.s32.totalorder %s32_s19, 2  ;;  %s48_s20 = sadd.s32 1, %s808_s14 }
   0x9   : > { %p55_p1 = scmp.ne.s32.totalorder %s808_s14, %s804_s13  ;;  %p56_p2 = scmp.eq.s32.totalorder %s820_s17, 0 }
   0xa   : > { %s1093_s19 = smov (%p33_p0, %s32_s19), 0  ;;  %p61_p4 = scmp.ne.s32.totalorder %s804_s13, %s800_s12 }
   0xb   : > { %p889_p3 = por %p56_p2, %p55_p1  ;;  %s44_s22 = ssub.s32 %s816_s16, %s1093_s19 }
   0xc   : > { %p62_p5 = scmp.eq.s32.totalorder %s530_s18, 0  ;;  %p46_p6 = scmp.eq.s32.totalorder %s44_s22, 0 }
   0xd   : > { %p603_p8 = scmp.lt.s32.totalorder %s820_s17, 2  ;;  %s907_s25 = sand.u32 1, %s808_s14  }
   0xe   : > { %p898_p7 = por %p62_p5, %p61_p4  ;;  %s535_s26 = sshll.u32 %s816_s16, 6 }
   0xf   : > { %s904_s24 = scalar_select %p46_p6, %s808_s14, %s48_s20  }
  0x10   : > { %s1081_s23 = scalar_select %p898_p7, 1, 0 }
  0x11   : > { %s534_s27 = sshll.u32 %s907_s25, 3  ;;  %s914_s30 = scalar_lea.hbm %s1075_s0, %s535_s26 }
  0x12   : > { %s177_s4 = scalar_lea.vmem [#allocation3], %s534_s27  ;;  %p918_p9 = pnand %p603_p8, %p889_p3 }
  0x13   : > { %s186_s5 = sshll.u32 %s177_s4, 4  ;;  %s174_s7 = scalar_lea.sflag [#allocation4], %s907_s25  ;;  %s922_s5 = int_to_ptr.vmem [resolvable:$true] %s186_s5 }
  0x14   : > { %s676_s8 = scalar_lea.hbm %s914_s30, 128  ;;  %p678_p12 = pneg %p918_p9 }
  0x15   : > { %p677_p11 = scmp.ne.s32.totalorder %s914_s30, %s676_s8  ;;  %s681_s11 = scalar_lea.hbm %s1075_s0, 256 }
  0x16   : > { %p682_p1 = scmp.lt.u32.totalorder %s914_s30, %s1075_s0  ;;  %p683_p2 = scmp.lt.u32.totalorder %s681_s11, %s676_s8 }
  0x17   : > { %p679_p13 = pnand %p678_p12, %p677_p11  ;;  %p685_p4 = scmp.lt.u32.totalorder %s676_s8, %s914_s30 }
  0x18   : > { %p684_p3 = por %p683_p2, %p682_p1 }
  0x19   : > { %p680_p0 = pneg %p679_p13 }
  0x1a   : > { %p686_p5 = por %p685_p4, %p684_p3 }
  0x1c   : > { %p687_p6 = pnand %p686_p5, %p680_p0 }
  0x1e   : > { %690 = shalt.err (!%p687_p6)
}
  0x1f   : > { %s691_s21 = scalar_lea.vmem %s922_s5, 128  ;;  %s822_s22 = smov [#allocation3]  }
  0x20   : > { %p692_p8 = scmp.ne.s32.totalorder %s922_s5, %s691_s21  ;;  %s696_s26 = sshll.u32 %s822_s22, 4  ;;  %s697_s26 = int_to_ptr.vmem [resolvable:$false] %s696_s26 }
  0x21   : > { %s698_s27 = scalar_lea.vmem %s697_s26, 256  ;;  %p699_p10 = scmp.lt.s32.totalorder %s922_s5, %s697_s26 }
  0x22   : > { %p694_p11 = pnand %p692_p8, %p678_p12  ;;  %p700_p1 = scmp.lt.s32.totalorder %s698_s27, %s691_s21 }
  0x24   : > { %p695_p13 = pneg %p694_p11  ;;  %p701_p2 = por %p700_p1, %p699_p10 }
  0x26   : > { %p702_p3 = pnand %p701_p2, %p695_p13 }
  0x28   : > { %705 = shalt.err (!%p702_p3)
}
  0x29   : > { %s823_s28 = smov 128   ;;  %s824_s29 = smov 64  }
  0x2a   : > { %s825_s4 = smov 4   ;;  %p216_p10 = scmp.lt.s32.totalorder %s820_s17, 3 }
  0x2b   : > { %599 = dma.hbm_to_vmem [thread:$0]  (!%p918_p9), %s914_s30, 128, %s922_s5, %s174_s7, %s823_s28, %s824_s29, %s825_s4  }
  0x2c   : > { %s536_s8 = sshll.u32 %s907_s25, 6  ;;  %s558_s9 = sshll.u32 %s816_s16, 10 }
  0x2d   : > { %p1083_p0 = scmp.ge.s32.totalorder %s820_s17, 1  ;;  %s967_s20 = scalar_lea.hbm %s1076_s1, %s558_s9 }
  0x2e   : > { %s200_s21 = scalar_lea.vmem [#allocation6], %s536_s8  ;;  %s197_s30 = scalar_lea.sflag [#allocation7], %s907_s25 }
  0x2f   : > { %p960_p4 = pnand %p1083_p0, %p216_p10  ;;  %s208_s22 = sshll.u32 %s200_s21, 4  ;;  %s969_s22 = int_to_ptr.vmem [resolvable:$true] %s208_s22 }
  0x30   : > { %s706_s5 = scalar_lea.hbm %s967_s20, 1024  ;;  %s711_s27 = scalar_lea.hbm %s1076_s1, 2048 }
  0x31   : > { %p707_p5 = scmp.ne.s32.totalorder %s967_s20, %s706_s5  ;;  %p712_p11 = scmp.lt.u32.totalorder %s967_s20, %s1076_s1 }
  0x32   : > { %p713_p13 = scmp.lt.u32.totalorder %s711_s27, %s706_s5  ;;  %p715_p2 = scmp.lt.u32.totalorder %s706_s5, %s967_s20 }
  0x33   : > { %p709_p6 = pnand %p707_p5, %p678_p12 }
  0x34   : > { %p714_p1 = por %p713_p13, %p712_p11 }
  0x35   : > { %p710_p8 = pneg %p709_p6 }
  0x36   : > { %p716_p3 = por %p715_p2, %p714_p1 }
  0x38   : > { %p717_p10 = pnand %p716_p3, %p710_p8 }
  0x3a   : > { %720 = shalt.err (!%p717_p10)
}
  0x3b   : > { %s721_s8 = scalar_lea.vmem %s969_s22, 1024  ;;  %s826_s11 = smov [#allocation6]  }
  0x3c   : > { %p722_p0 = scmp.ne.s32.totalorder %s969_s22, %s721_s8  ;;  %s726_s12 = sshll.u32 %s826_s11, 4  ;;  %s727_s12 = int_to_ptr.vmem [resolvable:$false] %s726_s12 }
  0x3d   : > { %s728_s21 = scalar_lea.vmem %s727_s12, 2048  ;;  %p729_p7 = scmp.lt.s32.totalorder %s969_s22, %s727_s12 }
  0x3e   : > { %p724_p5 = pnand %p722_p0, %p678_p12  ;;  %p730_p11 = scmp.lt.s32.totalorder %s728_s21, %s721_s8 }
  0x40   : > { %p725_p6 = pneg %p724_p5  ;;  %p731_p13 = por %p730_p11, %p729_p7 }
  0x42   : > { %p732_p1 = pnand %p731_p13, %p725_p6 }
  0x44   : > { %735 = shalt.err (!%p732_p1)
}
  0x45   : > { %602 = dma.hbm_to_vmem [thread:$0]  (!%p918_p9), %s967_s20, 1024, %s969_s22, %s197_s30, %s824_s29, %s824_s29, %s825_s4  }
  0x46   : > { %220 = sbr.rel (%p960_p4) target bundleno = 387 (0x183), region = 32  ;;  %s222_s5 = sand.u32 (!%p960_p4), 1, %s804_s13  }
  0x47   : > { %s540_s7 = sshll.u32 (!%p960_p4), %s222_s5, 3  ;;  %s223_s26 = scalar_lea.sflag (!%p960_p4), [#allocation4], %s222_s5 }
  0x48   : > { %s1003_s27 = scalar_lea.vmem (!%p960_p4), [#allocation3], %s540_s7  ;;  %p1085_p7 = scmp.ne.s32.totalorder (!%p960_p4), %s1081_s23, 0 }
  0x4d   : > { %787 = dma.done.wait (%p1085_p7), %s223_s26, 128  }
  0x4e   : > { %789 = vsyncadd (%p1085_p7), %s223_s26, 4294967168  ;;  %s541_s25 = sshll.u32 %s222_s5, 6  ;;  %s232_s6 = scalar_lea.sflag [#allocation7], %s222_s5 }
  0x4f   : > { %s1009_s28 = scalar_lea.vmem [#allocation6], %s541_s25 }
  0x50   : > { %791 = dma.done.wait (%p1085_p7), %s232_s6, 1024  }
  0x51   : > { %793 = vsyncadd (%p1085_p7), %s232_s6, 4294966272  ;;  %p542_p9 = scmp.ne.s32.totalorder %s812_s15, 0 }
  0x52   : > { %v827_v0 = vmov (!%p542_p9), 0.0  }
  0x53   : > { %271 = sbr.rel (%p542_p9) target bundleno = 90 (0x5a), region = 44  ;;  %272 = vst [vmem:[#allocation2] sm:$0xff] (!%p542_p9), %v827_v0  ;;  %273 = vst [vmem:[#allocation2 + $0x8] sm:$0xff] (!%p542_p9), %v827_v0 }
  0x5a PF: > { %v663_v1 = vld [vmem:[%s1009_s28] sm:$0xff]   ;;  %v828_v2 = vmov 0.0   ;;  %v664_v3 = vld [vmem:[%s1009_s28 + $0x8] sm:$0xff]   ;;  %vm829_vm0 = vmmov 0   ;;  %v665_v4 = vld [vmem:[%s1009_s28 + $0x10] sm:$0xff]   ;;  %p552_p12 = scmp.ne.s32.totalorder %s812_s15, 1 }
  0x5b   : > { %568 = vmatprep.subr.bf16.mxu0 %v828_v2  ;;  %584 = vmatprep.mubr.msk.bf16.mxu0 %vm829_vm0, %v828_v2  ;;  %v666_v5 = vld [vmem:[%s1009_s28 + $0x18] sm:$0xff]   ;;  %v667_v6 = vld [vmem:[%s1009_s28 + $0x20] sm:$0xff]   ;;  %v668_v7 = vld [vmem:[%s1009_s28 + $0x28] sm:$0xff]  }
  0x5c   : > { %569 = vmatpush3.bf16.msra.mxu0 %v663_v1  ;;  %v669_v8 = vld [vmem:[%s1009_s28 + $0x30] sm:$0xff]   ;;  %v670_v9 = vld [vmem:[%s1009_s28 + $0x38] sm:$0xff]   ;;  %v274_v11 = vld [vmem:[#allocation2] sm:$0xff] }
  0x5d   : > { %570 = vmatprep.subr.bf16.mxu0 %v828_v2  ;;  %v671_v10 = vld [vmem:[%s1003_s27] sm:$0xff]   ;;  %v275_v13 = vld [vmem:[#allocation2 + $0x8] sm:$0xff]  ;;  %v553_v20 = vld [vmem:[%s1077_s2] ss:$0 sm:$0xff] (!%p552_p12) }
  0x60   : > { %571 = vmatpush3.bf16.msra.mxu0 %v664_v3 }
  0x61   : > { %572 = vmatprep.subr.bf16.mxu0 %v828_v2 }
  0x64   : > { %573 = vmatpush3.bf16.msra.mxu0 %v665_v4 }
  0x65   : > { %574 = vmatprep.subr.bf16.mxu0 %v828_v2 }
  0x68   : > { %575 = vmatpush3.bf16.msra.mxu0 %v666_v5 }
  0x69   : > { %576 = vmatprep.subr.bf16.mxu0 %v828_v2 }
  0x6c   : > { %577 = vmatpush3.bf16.msra.mxu0 %v667_v6 }
  0x6d   : > { %578 = vmatprep.subr.bf16.mxu0 %v828_v2 }
  0x70   : > { %579 = vmatpush3.bf16.msra.mxu0 %v668_v7 }
  0x71   : > { %580 = vmatprep.subr.bf16.mxu0 %v828_v2 }
  0x74   : > { %581 = vmatpush3.bf16.msra.mxu0 %v669_v8 }
  0x75   : > { %582 = vmatprep.subr.bf16.mxu0 %v828_v2 }
  0x78   : > { %583 = vmatpush3.bf16.msra.mxu0 %v670_v9 }
  0x7b   : > { %585 = vmatmul.mubr.bf16.vlgmr.msra.gmra.mrb[0].mxu0 %v671_v10 }
 0x14d   : > { %396 = sbr.rel (%p552_p12) target bundleno = 361 (0x169), region = 48 }
 0x14e   : > { %v382_v12 = vpop.f32.mrb[0].mxu0 }
 0x14f   : > { %v389_v14 = vadd.f32 %v382_v12, %v274_v11  ;;  %v586_v15 = vpop.f32.mrb[1].mxu0 }
 0x150   : > { %v385_v16 = vpop.f32.mrb[2].mxu0 }
 0x151   : > { %391 = vst [vmem:[#allocation2] sm:$0xff] %v389_v14  ;;  %v390_v17 = vadd.f32 %v385_v16, %v275_v13  ;;  %v587_v18 = vpop.f32.mrb[3].mxu0 }
 0x153   : > { %392 = vst [vmem:[#allocation2 + $0x8] sm:$0xff] %v390_v17 }
 0x158   : > { %v397_v19 = vld [vmem:[#allocation2] sm:$0xff] }
 0x159   : > { %v406_v22 = vadd.f32 %v553_v20, %v397_v19 }
 0x15a   : > { %v398_v21 = vld [vmem:[#allocation2 + $0x8] sm:$0xff] }
 0x15b   : > { %v407_v23 = vadd.f32 %v553_v20, %v398_v21  ;;  %672 = vtanh.f32 %v406_v22 }
 0x15d   : > { %674 = vtanh.f32 %v407_v23 }
 0x165   : > { %v673_v24 = vpop.eup %672 }
 0x166   : > { %410 = vst [vmem:[#allocation8] sm:$0xff] %v673_v24 }
 0x167   : > { %v675_v25 = vpop.eup %674 }
 0x168   : > { %411 = vst [vmem:[#allocation8 + $0x8] sm:$0xff] %v675_v25 }
 0x169 PF: > { %p1031_p4 = scmp.eq.s32.totalorder %s530_s18, 1  ;;  %s830_s4 = smov [#allocation8]  }
 0x16a   : > { %s422_s10 = sshll.u32 %s830_s4, 4  ;;  %s423_s10 = int_to_ptr.vmem [resolvable:$true] %s422_s10 }
 0x16b   : > { %s736_s20 = scalar_lea.vmem %s423_s10, 256  ;;  %p743_p10 = scmp.lt.s32.totalorder %s423_s10, %s423_s10 }
 0x16c   : > { %p737_p8 = scmp.ne.s32.totalorder %s423_s10, %s736_s20  ;;  %p744_p0 = scmp.lt.s32.totalorder %s736_s20, %s736_s20 }
 0x16e   : > { %p738_p2 = pnand %p737_p8, %p1031_p4  ;;  %p745_p5 = por %p744_p0, %p743_p10 }
 0x170   : > { %p739_p3 = pneg %p738_p2 }
 0x172   : > { %p746_p6 = pnand %p745_p5, %p739_p3 }
 0x174   : > { %749 = shalt.err (!%p746_p6)
}
 0x175   : > { %s750_s18 = scalar_lea.hbm %s1078_s3, 256 }
 0x176   : > { %p751_p11 = scmp.ne.s32.totalorder %s1078_s3, %s750_s18  ;;  %p756_p7 = scmp.lt.u32.totalorder %s750_s18, %s1078_s3 }
 0x178   : > { %p752_p13 = pnand %p751_p11, %p1031_p4 }
 0x17a   : > { %p753_p1 = pneg %p752_p13 }
 0x17c   : > { %p758_p9 = pnand %p756_p7, %p753_p1 }
 0x17e   : > { %761 = shalt.err (!%p758_p9)
}
 0x17f   : > { %s831_s21 = smov 128   ;;  %s832_s5 = smov 8  }
 0x180   : > { %593 = dma.vmem_to_hbm [thread:$0]  (%p1031_p4), %s423_s10, 256, %s1078_s3, [#allocation5], %s831_s21, %s831_s21, %s832_s5  }
 0x181   : > { %795 = dma.done.wait (%p1031_p4), [#allocation5], 256  }
 0x182   : > { %797 = vsyncadd (%p1031_p4), [#allocation5], 4294967040 }
 0x183 PF: > { %s20_s17 = sadd.s32 1, %s820_s17   ;;  %s1087_s12 = smov %s804_s13 }
 0x184   : > { %p17_p12 = scmp.ge.s32.totalorder %s20_s17, 4   ;;  %s1088_s13 = smov %s808_s14 }
 0x185   : > { %s1089_s14 = smov %s904_s24  ;;  %s1090_s15 = smov %s816_s16 }
 0x186   : > { %s1091_s16 = smov %s1093_s19  ;;  %19 = sbr.rel (!%p17_p12) target bundleno = 7 (0x7), region = 94 }
 0x18d   :  { %438 = vsyncpa [#allocation4], 1 }
 0x18e   :  { %440 = vsyncpa [#allocation4 + $0x1], 1 }
 0x18f   :  { %441 = vsyncpa [#allocation7], 1 }
 0x190   :  { %443 = vsyncpa [#allocation7 + $0x1], 1 }
 0x191   :  { %444 = vsyncpa [#allocation5], 1 }
 0x192   :  { %446 = vsyncpa [#allocation5 + $0x1], 1 }

</bundles_post_ra>
